<compile_context>
chip_gen: v5e
topology: v5e:2x2
jax: 0.10.0
libtpu: 0.0.40
codegen_flags: <defaults>
</compile_context>

<pallas_src>
import functools
from math import sqrt

import jax
import jax.numpy as jnp
import numpy as np
from jax import lax
from jax.experimental import pallas as pl
from jax.experimental.pallas import tpu as pltpu


def _round_up(x, m):
    return (x + m - 1) // m * m


def _eq_conv2d_kernel(x_ref, w_ref, b_ref, o_ref, *, ksize, w_pad, mp):
    # x_ref: (1, C_in, L)       zero-padded, flattened input (lane-dense)
    # w_ref: (K*K, tco, C_in)   EqualLR-scaled weight, one (tco, C_in) tile per tap
    # b_ref: (tco, 1)           bias
    # o_ref: (1, tco, Mp)       stride-1 conv output in the padded-width domain
    acc = jnp.zeros(o_ref.shape[1:], dtype=jnp.float32)
    for kh in range(ksize):
        for kw in range(ksize):
            off = kh * w_pad + kw                      # static lane offset of this tap
            x_sl = x_ref[0, :, off:off + mp]           # (C_in, Mp)
            w_kk = w_ref[kh * ksize + kw]              # (tco, C_in)
            acc = acc + jnp.dot(w_kk, x_sl, preferred_element_type=jnp.float32)
    o_ref[0] = (acc + b_ref[...]).astype(o_ref.dtype)


def equalized_conv2d(x, weight_orig, bias, *, stride=1, pad=0, cout_tile=None):
    B, C_in, H, W = x.shape
    C_out, C_in_w, K, K2 = weight_orig.shape
    assert C_in_w == C_in and K == K2

    # EqualLR forward-pre-hook: weight = weight_orig * sqrt(2 / fan_in)
    fan_in = C_in * K * K
    w_eff = (weight_orig * jnp.float32(sqrt(2.0 / fan_in))).astype(jnp.float32)

    # ---- layout plumbing (XLA side, pure data movement) ----
    H_pad, W_pad = H + 2 * pad, W + 2 * pad
    H1, W1 = H_pad - K + 1, W_pad - K + 1            # stride-1 output extent
    M = H1 * W_pad                                    # flattened rows incl. junk cols
    Mp = _round_up(M, 128)                            # lane-dense output width
    max_off = (K - 1) * W_pad + (K - 1)
    L = _round_up(max_off + Mp, 128)                  # lane-dense input width

    x_p = jnp.pad(x, ((0, 0), (0, 0), (pad, pad), (pad, pad)))
    x_flat = x_p.reshape(B, C_in, H_pad * W_pad)
    x_flat = jnp.pad(x_flat, ((0, 0), (0, 0), (0, L - H_pad * W_pad)))

    # (C_out, C_in, K, K) -> (K*K, C_out, C_in): w_r[kh*K+kw] is a 2-D MXU tile.
    w_r = jnp.transpose(w_eff, (2, 3, 0, 1)).reshape(K * K, C_out, C_in)
    b_r = bias.astype(jnp.float32).reshape(C_out, 1)

    # Output-channel tiling (bounds VMEM for large C_out; full C_out here).
    tco = C_out if cout_tile is None else min(cout_tile, C_out)
    assert tco == C_out or tco % 8 == 0
    n_co = pl.cdiv(C_out, tco)
    # TODO(synk): for very large C_in*H*W, add a spatial-row grid axis with a
    # (K-1)-row halo so the per-step x tile stays ~2-4 MiB on v7x/v5e.

    kernel = functools.partial(_eq_conv2d_kernel, ksize=K, w_pad=W_pad, mp=Mp)
    out_flat = pl.pallas_call(
        kernel,
        grid=(B, n_co),
        in_specs=[
            pl.BlockSpec((1, C_in, L), lambda b, c: (b, 0, 0)),
            pl.BlockSpec((K * K, tco, C_in), lambda b, c: (0, c, 0)),
            pl.BlockSpec((tco, 1), lambda b, c: (c, 0)),
        ],
        out_specs=pl.BlockSpec((1, tco, Mp), lambda b, c: (b, c, 0)),
        out_shape=jax.ShapeDtypeStruct((B, C_out, Mp), x.dtype),
        compiler_params=pltpu.CompilerParams(
            dimension_semantics=("parallel", "parallel")),
    )(x_flat, w_r, b_r)

    # Strip junk/padding columns, then apply stride by subsampling (matches
    # PyTorch conv geometry exactly).
    out = out_flat[:, :, :M].reshape(B, C_out, H1, W_pad)[:, :, :, :W1]
    if stride > 1:
        out = out[:, :, ::stride, ::stride]
    return out


def equalized_conv2d_reference(x, weight_orig, bias, *, stride=1, pad=0):
    # Pure-JAX reference mirroring the PyTorch module exactly.
    fan_in = weight_orig.shape[1] * weight_orig.shape[2] * weight_orig.shape[3]
    w_eff = weight_orig * jnp.float32(sqrt(2.0 / fan_in))
    out = lax.conv_general_dilated(
        x, w_eff, window_strides=(stride, stride),
        padding=((pad, pad), (pad, pad)),
        dimension_numbers=("NCHW", "OIHW", "NCHW"))
    return out + bias.reshape(1, -1, 1, 1)


if __name__ == "__main__":
    key = jax.random.PRNGKey(0)
    B, C_IN, C_OUT, K, STRIDE, PAD, H, W = 2, 4, 8, 3, 1, 1, 16, 16
    k1, k2 = jax.random.split(key)

    x = jax.random.normal(k1, (B, C_IN, H, W), dtype=jnp.float32)
    # nn.Conv2d: weight.normal_(), bias.zero_()
    weight_orig = jax.random.normal(k2, (C_OUT, C_IN, K, K), dtype=jnp.float32)
    bias = jnp.zeros((C_OUT,), dtype=jnp.float32)

    out = equalized_conv2d(x, weight_orig, bias, stride=STRIDE, pad=PAD)
    out = jax.block_until_ready(out)

    ref = equalized_conv2d_reference(x, weight_orig, bias, stride=STRIDE, pad=PAD)
    np.testing.assert_allclose(np.asarray(out), np.asarray(ref), rtol=1e-4, atol=1e-4)

    print("KERNEL_OK")
</pallas_src>

<mosaic_0001>
module attributes {stable_mosaic.version = 11 : i64} {
  func.func @_eq_conv2d_kernel(%arg0: i32, %arg1: i32, %arg2: memref<1x4x512xf32, #tpu.memory_space<vmem>>, %arg3: memref<9x8x4xf32, #tpu.memory_space<vmem>>, %arg4: memref<8x1xf32, #tpu.memory_space<vmem>>, %arg5: memref<1x8x384xf32, #tpu.memory_space<vmem>>) attributes {dimension_semantics = [#tpu.dimension_semantics<parallel>, #tpu.dimension_semantics<parallel>], iteration_bounds = array<i64: 2, 1>, scalar_prefetch = 0 : i64, scratch_operands = 0 : i64, tpu.core_type = #tpu.core_type<tc>, window_params = [{transform_indices = @transform_0, window_bounds = array<i64: 1, 4, 512>}, {transform_indices = @transform_1, window_bounds = array<i64: 9, 8, 4>}, {transform_indices = @transform_2, window_bounds = array<i64: 8, 1>}, {transform_indices = @transform_3, window_bounds = array<i64: 1, 8, 384>}]} {
    %cst = arith.constant 0.000000e+00 : f32
    %0 = vector.broadcast %cst : f32 to vector<8x384xf32>
    %c0 = arith.constant 0 : index
    %c0_0 = arith.constant 0 : index
    %c0_1 = arith.constant 0 : index
    %1 = vector.load %arg2[%c0, %c0_0, %c0_1] : memref<1x4x512xf32, #tpu.memory_space<vmem>>, vector<1x4x384xf32>
    %2 = vector.shape_cast %1 : vector<1x4x384xf32> to vector<4x384xf32>
    %c0_2 = arith.constant 0 : index
    %c0_3 = arith.constant 0 : index
    %c0_4 = arith.constant 0 : index
    %3 = vector.load %arg3[%c0_2, %c0_3, %c0_4] : memref<9x8x4xf32, #tpu.memory_space<vmem>>, vector<1x8x4xf32>
    %4 = vector.shape_cast %3 : vector<1x8x4xf32> to vector<8x4xf32>
    %cst_5 = arith.constant dense<0.000000e+00> : vector<8x384xf32>
    %5 = tpu.matmul %4, %2, %cst_5 {dimension_numbers = #tpu.dot_dimension_numbers<[1], [0], [0], [1], [0, 0, 1, 1], [], []>} : vector<8x4xf32>, vector<4x384xf32>, vector<8x384xf32> -> vector<8x384xf32>
    %6 = arith.addf %0, %5 : vector<8x384xf32>
    %c0_6 = arith.constant 0 : index
    %c0_7 = arith.constant 0 : index
    %c1 = arith.constant 1 : index
    %7 = vector.load %arg2[%c0_6, %c0_7, %c1] : memref<1x4x512xf32, #tpu.memory_space<vmem>>, vector<1x4x384xf32>
    %8 = vector.shape_cast %7 : vector<1x4x384xf32> to vector<4x384xf32>
    %c1_8 = arith.constant 1 : index
    %c0_9 = arith.constant 0 : index
    %c0_10 = arith.constant 0 : index
    %9 = vector.load %arg3[%c1_8, %c0_9, %c0_10] : memref<9x8x4xf32, #tpu.memory_space<vmem>>, vector<1x8x4xf32>
    %10 = vector.shape_cast %9 : vector<1x8x4xf32> to vector<8x4xf32>
    %cst_11 = arith.constant dense<0.000000e+00> : vector<8x384xf32>
    %11 = tpu.matmul %10, %8, %cst_11 {dimension_numbers = #tpu.dot_dimension_numbers<[1], [0], [0], [1], [0, 0, 1, 1], [], []>} : vector<8x4xf32>, vector<4x384xf32>, vector<8x384xf32> -> vector<8x384xf32>
    %12 = arith.addf %6, %11 : vector<8x384xf32>
    %c0_12 = arith.constant 0 : index
    %c0_13 = arith.constant 0 : index
    %c2 = arith.constant 2 : index
    %13 = vector.load %arg2[%c0_12, %c0_13, %c2] : memref<1x4x512xf32, #tpu.memory_space<vmem>>, vector<1x4x384xf32>
    %14 = vector.shape_cast %13 : vector<1x4x384xf32> to vector<4x384xf32>
    %c2_14 = arith.constant 2 : index
    %c0_15 = arith.constant 0 : index
    %c0_16 = arith.constant 0 : index
    %15 = vector.load %arg3[%c2_14, %c0_15, %c0_16] : memref<9x8x4xf32, #tpu.memory_space<vmem>>, vector<1x8x4xf32>
    %16 = vector.shape_cast %15 : vector<1x8x4xf32> to vector<8x4xf32>
    %cst_17 = arith.constant dense<0.000000e+00> : vector<8x384xf32>
    %17 = tpu.matmul %16, %14, %cst_17 {dimension_numbers = #tpu.dot_dimension_numbers<[1], [0], [0], [1], [0, 0, 1, 1], [], []>} : vector<8x4xf32>, vector<4x384xf32>, vector<8x384xf32> -> vector<8x384xf32>
    %18 = arith.addf %12, %17 : vector<8x384xf32>
    %c0_18 = arith.constant 0 : index
    %c0_19 = arith.constant 0 : index
    %c18 = arith.constant 18 : index
    %19 = vector.load %arg2[%c0_18, %c0_19, %c18] : memref<1x4x512xf32, #tpu.memory_space<vmem>>, vector<1x4x384xf32>
    %20 = vector.shape_cast %19 : vector<1x4x384xf32> to vector<4x384xf32>
    %c3 = arith.constant 3 : index
    %c0_20 = arith.constant 0 : index
    %c0_21 = arith.constant 0 : index
    %21 = vector.load %arg3[%c3, %c0_20, %c0_21] : memref<9x8x4xf32, #tpu.memory_space<vmem>>, vector<1x8x4xf32>
    %22 = vector.shape_cast %21 : vector<1x8x4xf32> to vector<8x4xf32>
    %cst_22 = arith.constant dense<0.000000e+00> : vector<8x384xf32>
    %23 = tpu.matmul %22, %20, %cst_22 {dimension_numbers = #tpu.dot_dimension_numbers<[1], [0], [0], [1], [0, 0, 1, 1], [], []>} : vector<8x4xf32>, vector<4x384xf32>, vector<8x384xf32> -> vector<8x384xf32>
    %24 = arith.addf %18, %23 : vector<8x384xf32>
    %c0_23 = arith.constant 0 : index
    %c0_24 = arith.constant 0 : index
    %c19 = arith.constant 19 : index
    %25 = vector.load %arg2[%c0_23, %c0_24, %c19] : memref<1x4x512xf32, #tpu.memory_space<vmem>>, vector<1x4x384xf32>
    %26 = vector.shape_cast %25 : vector<1x4x384xf32> to vector<4x384xf32>
    %c4 = arith.constant 4 : index
    %c0_25 = arith.constant 0 : index
    %c0_26 = arith.constant 0 : index
    %27 = vector.load %arg3[%c4, %c0_25, %c0_26] : memref<9x8x4xf32, #tpu.memory_space<vmem>>, vector<1x8x4xf32>
    %28 = vector.shape_cast %27 : vector<1x8x4xf32> to vector<8x4xf32>
    %cst_27 = arith.constant dense<0.000000e+00> : vector<8x384xf32>
    %29 = tpu.matmul %28, %26, %cst_27 {dimension_numbers = #tpu.dot_dimension_numbers<[1], [0], [0], [1], [0, 0, 1, 1], [], []>} : vector<8x4xf32>, vector<4x384xf32>, vector<8x384xf32> -> vector<8x384xf32>
    %30 = arith.addf %24, %29 : vector<8x384xf32>
    %c0_28 = arith.constant 0 : index
    %c0_29 = arith.constant 0 : index
    %c20 = arith.constant 20 : index
    %31 = vector.load %arg2[%c0_28, %c0_29, %c20] : memref<1x4x512xf32, #tpu.memory_space<vmem>>, vector<1x4x384xf32>
    %32 = vector.shape_cast %31 : vector<1x4x384xf32> to vector<4x384xf32>
    %c5 = arith.constant 5 : index
    %c0_30 = arith.constant 0 : index
    %c0_31 = arith.constant 0 : index
    %33 = vector.load %arg3[%c5, %c0_30, %c0_31] : memref<9x8x4xf32, #tpu.memory_space<vmem>>, vector<1x8x4xf32>
    %34 = vector.shape_cast %33 : vector<1x8x4xf32> to vector<8x4xf32>
    %cst_32 = arith.constant dense<0.000000e+00> : vector<8x384xf32>
    %35 = tpu.matmul %34, %32, %cst_32 {dimension_numbers = #tpu.dot_dimension_numbers<[1], [0], [0], [1], [0, 0, 1, 1], [], []>} : vector<8x4xf32>, vector<4x384xf32>, vector<8x384xf32> -> vector<8x384xf32>
    %36 = arith.addf %30, %35 : vector<8x384xf32>
    %c0_33 = arith.constant 0 : index
    %c0_34 = arith.constant 0 : index
    %c36 = arith.constant 36 : index
    %37 = vector.load %arg2[%c0_33, %c0_34, %c36] : memref<1x4x512xf32, #tpu.memory_space<vmem>>, vector<1x4x384xf32>
    %38 = vector.shape_cast %37 : vector<1x4x384xf32> to vector<4x384xf32>
    %c6 = arith.constant 6 : index
    %c0_35 = arith.constant 0 : index
    %c0_36 = arith.constant 0 : index
    %39 = vector.load %arg3[%c6, %c0_35, %c0_36] : memref<9x8x4xf32, #tpu.memory_space<vmem>>, vector<1x8x4xf32>
    %40 = vector.shape_cast %39 : vector<1x8x4xf32> to vector<8x4xf32>
    %cst_37 = arith.constant dense<0.000000e+00> : vector<8x384xf32>
    %41 = tpu.matmul %40, %38, %cst_37 {dimension_numbers = #tpu.dot_dimension_numbers<[1], [0], [0], [1], [0, 0, 1, 1], [], []>} : vector<8x4xf32>, vector<4x384xf32>, vector<8x384xf32> -> vector<8x384xf32>
    %42 = arith.addf %36, %41 : vector<8x384xf32>
    %c0_38 = arith.constant 0 : index
    %c0_39 = arith.constant 0 : index
    %c37 = arith.constant 37 : index
    %43 = vector.load %arg2[%c0_38, %c0_39, %c37] : memref<1x4x512xf32, #tpu.memory_space<vmem>>, vector<1x4x384xf32>
    %44 = vector.shape_cast %43 : vector<1x4x384xf32> to vector<4x384xf32>
    %c7 = arith.constant 7 : index
    %c0_40 = arith.constant 0 : index
    %c0_41 = arith.constant 0 : index
    %45 = vector.load %arg3[%c7, %c0_40, %c0_41] : memref<9x8x4xf32, #tpu.memory_space<vmem>>, vector<1x8x4xf32>
    %46 = vector.shape_cast %45 : vector<1x8x4xf32> to vector<8x4xf32>
    %cst_42 = arith.constant dense<0.000000e+00> : vector<8x384xf32>
    %47 = tpu.matmul %46, %44, %cst_42 {dimension_numbers = #tpu.dot_dimension_numbers<[1], [0], [0], [1], [0, 0, 1, 1], [], []>} : vector<8x4xf32>, vector<4x384xf32>, vector<8x384xf32> -> vector<8x384xf32>
    %48 = arith.addf %42, %47 : vector<8x384xf32>
    %c0_43 = arith.constant 0 : index
    %c0_44 = arith.constant 0 : index
    %c38 = arith.constant 38 : index
    %49 = vector.load %arg2[%c0_43, %c0_44, %c38] : memref<1x4x512xf32, #tpu.memory_space<vmem>>, vector<1x4x384xf32>
    %50 = vector.shape_cast %49 : vector<1x4x384xf32> to vector<4x384xf32>
    %c8 = arith.constant 8 : index
    %c0_45 = arith.constant 0 : index
    %c0_46 = arith.constant 0 : index
    %51 = vector.load %arg3[%c8, %c0_45, %c0_46] : memref<9x8x4xf32, #tpu.memory_space<vmem>>, vector<1x8x4xf32>
    %52 = vector.shape_cast %51 : vector<1x8x4xf32> to vector<8x4xf32>
    %cst_47 = arith.constant dense<0.000000e+00> : vector<8x384xf32>
    %53 = tpu.matmul %52, %50, %cst_47 {dimension_numbers = #tpu.dot_dimension_numbers<[1], [0], [0], [1], [0, 0, 1, 1], [], []>} : vector<8x4xf32>, vector<4x384xf32>, vector<8x384xf32> -> vector<8x384xf32>
    %54 = arith.addf %48, %53 : vector<8x384xf32>
    %c0_48 = arith.constant 0 : index
    %c0_49 = arith.constant 0 : index
    %55 = vector.load %arg4[%c0_48, %c0_49] : memref<8x1xf32, #tpu.memory_space<vmem>>, vector<8x1xf32>
    %56 = vector.broadcast %55 : vector<8x1xf32> to vector<8x384xf32>
    %57 = arith.addf %54, %56 : vector<8x384xf32>
    %c0_50 = arith.constant 0 : index
    %c0_51 = arith.constant 0 : index
    %c0_52 = arith.constant 0 : index
    %58 = vector.load %arg5[%c0_50, %c0_51, %c0_52] : memref<1x8x384xf32, #tpu.memory_space<vmem>>, vector<1x8x384xf32>
    %59 = vector.shape_cast %58 : vector<1x8x384xf32> to vector<8x384xf32>
    %60 = vector.shape_cast %57 : vector<8x384xf32> to vector<1x8x384xf32>
    tpu.vector_store %arg5[%c0_50, %c0_51, %c0_52], %60 {strides = array<i32>} : memref<1x8x384xf32, #tpu.memory_space<vmem>>, vector<1x8x384xf32>,
    return
  }
  func.func @transform_0(%arg0: i32, %arg1: i32) -> (i32, i32, i32) {
    %c0_i32 = arith.constant 0 : i32
    %c0_i32_0 = arith.constant 0 : i32
    %c0_i32_1 = arith.constant 0 : i32
    return %arg0, %c0_i32, %c0_i32_0 : i32, i32, i32
  }
  func.func @transform_1(%arg0: i32, %arg1: i32) -> (i32, i32, i32) {
    %c0_i32 = arith.constant 0 : i32
    %c0_i32_0 = arith.constant 0 : i32
    %c0_i32_1 = arith.constant 0 : i32
    return %c0_i32, %arg1, %c0_i32_0 : i32, i32, i32
  }
  func.func @transform_2(%arg0: i32, %arg1: i32) -> (i32, i32) {
    %c0_i32 = arith.constant 0 : i32
    %c0_i32_0 = arith.constant 0 : i32
    return %arg1, %c0_i32 : i32, i32
  }
  func.func @transform_3(%arg0: i32, %arg1: i32) -> (i32, i32, i32) {
    %c0_i32 = arith.constant 0 : i32
    %c0_i32_0 = arith.constant 0 : i32
    return %arg0, %arg1, %c0_i32 : i32, i32, i32
  }
}

</mosaic_0001>

<bundles_post_ra>
// kernel: tpu_custom_call.1
= control target key start
LH: loop header
LB: loop body
LE: loop exit
PB: predicated region body
PF: predicated region fallthrough
CT: control target
= control target key end

     0   :  { %8 = vsyncpa [#allocation3], 0  ;;  %s1685_s0 = inlined_call_operand.vmem [shape: f32[2,4,512], index: 0, kind: input, shape index: {}]   ;;  %s1686_s1 = inlined_call_operand.vmem [shape: f32[9,8,4], index: 1, kind: input, shape index: {}]   ;;  %s1687_s2 = inlined_call_operand.vmem [shape: f32[8,1], index: 2, kind: input, shape index: {}]   ;;  %s1688_s3 = inlined_call_operand.hbm [shape: f32[2,8,384], index: 3, kind: output, shape index: {}]  }
   0x1   :  { %10 = vsyncpa [#allocation3 + $0x1], 0  ;;  %s1455_s12 = smov 0   ;;  %s1457_s13 = smov 0  }
   0x2   :  { %s1459_s14 = smov 0   ;;  %s1461_s15 = smov 0  }
   0x3   :  { %s1463_s16 = smov 0   ;;  %s1465_s17 = smov 0  }
   0x4 LB: > { %s1203_s18 = sadd.s32 4294967295, %s1424_s17   ;;  %s1204_s19 = sadd.s32 4294967294, %s1424_s17   ;;  %s1424_s17 = sphi %s1465_s17, %s16_s17   ;;  %s1420_s16 = sphi %s1463_s16, %s1695_s16   ;;  %s1416_s15 = sphi %s1461_s15, %s1694_s15   ;;  %s1412_s14 = sphi %s1459_s14, %s1693_s14   ;;  %s1408_s13 = sphi %s1457_s13, %s1692_s13   ;;  %s1404_s12 = sphi %s1455_s12, %s1691_s12  }
   0x5   : > { %s28_s20 = sadd.s32 1, %s1420_s16  ;;  %s115_s21 = sadd.s32 1, %s1412_s14 }
   0x6   : > { %p30_p0 = scmp.ge.s32.totalorder %s28_s20, 2  ;;  %p125_p1 = scmp.ne.s32.totalorder %s1412_s14, %s1408_s13 }
   0x7   : > { %p126_p2 = scmp.eq.s32.totalorder %s1203_s18, 1  ;;  %p131_p3 = scmp.ne.s32.totalorder %s1408_s13, %s1404_s12 }
   0x8   : > { %s1697_s20 = smov (%p30_p0, %s28_s20), 0  ;;  %p132_p5 = scmp.eq.s32.totalorder %s1204_s19, 1 }
   0x9   : > { %p1495_p4 = por %p126_p2, %p125_p1  ;;  %s110_s23 = ssub.s32 %s1420_s16, %s1697_s20 }
   0xa   : > { %p1209_p6 = scmp.ge.s32.totalorder %s1424_s17, 1  ;;  %p113_p7 = scmp.eq.s32.totalorder %s110_s23, 0 }
   0xb   : > { %p1502_p8 = por %p132_p5, %p131_p3  ;;  %p172_p9 = scmp.lt.s32.totalorder %s1424_s17, 3 }
   0xc   : > { %s1508_s25 = scalar_select %p113_p7, %s1412_s14, %s115_s21  }
   0xd   : > { %p173_p10 = pnand %p1209_p6, %p172_p9 }
   0xe   : > { %p204_p11 = scmp.lt.s32.totalorder (!%p173_p10), %s1416_s15, 1  ;;  %s1426_s4 = smov (!%p173_p10), 127  }
   0xf   : > { %176 = sbr.rel (%p173_p10) target bundleno = 374 (0x176), region = 32  ;;  %s1427_s5 = smov (!%p173_p10), 126  }
  0x10   : > { %s1428_s6 = smov (!%p173_p10), 110   ;;  %s1429_s7 = smov (!%p173_p10), 109  }
  0x11   : > { %s1430_s8 = smov (!%p173_p10), 108   ;;  %s1431_s9 = smov (!%p173_p10), 92  }
  0x12   : > { %s1432_s10 = smov (!%p173_p10), 91   ;;  %s1433_s11 = smov (!%p173_p10), 90  }
  0x13   : > { %s201_s23 = sand.u32 (!%p173_p10), 1, %s1408_s13  }
  0x14   : > { %s205_s26 = scalar_select %p204_p11, %s1416_s15, 1  ;;  %vm249_vm0 = vcmask 1043456   ;;  %vm245_vm1 = vcmask 31744   ;;  %v219_v39 = vld [vmem:[%s1686_s1] sm:$0xff]  ;;  %vm241_vm2 = vcmask 1039360   ;;  %vm414_vm3 = vcmask 1031168  }
  0x15   : > { %v1212_v50 = vld [vmem:[%s1686_s1 + $0x8] sm:$0xff]  ;;  %vm511_vm4 = vcmask 900096   ;;  %v1225_v54 = vld [vmem:[%s1686_s1 + $0x10] sm:$0xff]  ;;  %v1232_v60 = vld [vmem:[%s1686_s1 + $0x18] sm:$0xff]  ;;  %vm608_vm5 = vcmask 891904   ;;  %vm705_vm6 = vcmask 883712  }
  0x16   : > { %s1277_s27 = sshll.u32 %s205_s26, 4  ;;  %vm802_vm7 = vcmask 752640   ;;  %vm899_vm8 = vcmask 744448   ;;  %vm996_vm9 = vcmask 736256   ;;  %s1278_s26 = smul.u32 24, %s201_s23 }
  0x17   : > { %s208_s30 = scalar_lea.vmem %s1685_s0, %s1277_s27  ;;  %s1279_s27 = smul.u32 24, %s1416_s15 }
  0x18   : > { %v1515_v0 = vld [vmem:[%s208_s30 + $0x8] sm:$0xff]  ;;  %v1517_v1 = vld [vmem:[%s208_s30] sm:$0xff]  ;;  %s203_s15 = scalar_lea.vmem [#allocation2], %s1278_s26 }
  0x19   : > { %228 = vst [vmem:[#allocation1 + $0x10] ss:$2 sm:$0xff] %v1515_v0  ;;  %v218_v2 = vld [vmem:[%s208_s30 + $0x8] sm:$0xf]  ;;  %s1098_s30 = scalar_lea.hbm %s1688_s3, %s1279_s27 }
  0x1a   : > { %226 = vst [vmem:[#allocation1] ss:$2 sm:$0xff] %v1517_v1 }
  0x20   : > { %v231_v3 = vld.sshfl [vmem:[#allocation1 + $0x10] sm:$0xff pattern:$0x75316420]  ;;  %v232_v4 = vld.sshfl [vmem:[#allocation1 + $0x18] sm:$0xff pattern:$0x75316420] }
  0x21   : > { %237 = vrot.lane.b32.xlu0 %v231_v3, %s1426_s4  ;;  %v229_v5 = vld.sshfl [vmem:[#allocation1] sm:$0xff pattern:$0x75316420]  ;;  %320 = vst [vmem:[#allocation1 + $0x10] ss:$2 sm:$0xff] %v218_v2 }
  0x22   : > { %233 = vrot.lane.b32.xlu1 %v229_v5, %s1426_s4  ;;  %v230_v6 = vld.sshfl [vmem:[#allocation1 + $0x8] sm:$0xff pattern:$0x75316420]  ;;  %v1239_v3 = vld [vmem:[%s1686_s1 + $0x20] sm:$0xff] }
  0x23   : > { %318 = vst [vmem:[#allocation1] ss:$2 sm:$0xff] %v1517_v1 }
  0x28   : > { %v1522_v7 = vld.sshfl [vmem:[#allocation1 + $0x10] sm:$0xff pattern:$0x75316420] }
  0x29   : > { %239 = vrot.lane.b32.xlu0 %v232_v4, %s1426_s4  ;;  %401 = vst [vmem:[#allocation1 + $0x10] ss:$2 sm:$0xff] %v1515_v0 }
  0x2a   : > { %235 = vrot.lane.b32.xlu1 %v230_v6, %s1426_s4  ;;  %v1525_v8 = vld.sshfl [vmem:[#allocation1] sm:$0xff pattern:$0x75316420]  ;;  %v1527_v9 = vld.sshfl [vmem:[#allocation1 + $0x8] sm:$0xff pattern:$0x75316420] }
  0x2b   : > { %399 = vst [vmem:[#allocation1] ss:$2 sm:$0xff] %v1517_v1  ;;  %1219 = vmatpush.msk.msra.mxu3 %vm249_vm0, %v1525_v8  ;;  %s1100_s4 = sshll.u32 %s203_s15, 4  ;;  %s1101_s4 = int_to_ptr.vmem [resolvable:$true] %s1100_s4 }
  0x2c   : > { %1220 = vmatmul.msk.f32.vlgmr.msra.gmra.mxu3 %vm245_vm1, %v219_v39 }
  0x30   : > { %v404_v10 = vld.sshfl [vmem:[#allocation1 + $0x10] sm:$0xff pattern:$0x75316420]  ;;  %v405_v11 = vld.sshfl [vmem:[#allocation1 + $0x18] sm:$0xff pattern:$0x75316420] }
  0x31   : > { %410 = vrot.lane.b32.xlu0 %v404_v10, %s1427_s5  ;;  %498 = vst [vmem:[#allocation1 + $0x10] ss:$2 sm:$0xff] %v1515_v0 }
  0x32   : > { %v402_v12 = vld.sshfl [vmem:[#allocation1] sm:$0xff pattern:$0x75316420]  ;;  %v403_v13 = vld.sshfl [vmem:[#allocation1 + $0x8] sm:$0xff pattern:$0x75316420] }
  0x33   : > { %406 = vrot.lane.b32.xlu2 %v402_v12, %s1427_s5  ;;  %496 = vst [vmem:[#allocation1] ss:$2 sm:$0xff] %v1517_v1 }
  0x38   : > { %v501_v14 = vld.sshfl [vmem:[#allocation1 + $0x10] sm:$0xff pattern:$0x75316420]  ;;  %v502_v15 = vld.sshfl [vmem:[#allocation1 + $0x18] sm:$0xff pattern:$0x75316420] }
  0x39   : > { %412 = vrot.lane.b32.xlu0 %v405_v11, %s1427_s5  ;;  %595 = vst [vmem:[#allocation1 + $0x10] ss:$2 sm:$0xff] %v1515_v0  ;;  %v1246_v11 = vld [vmem:[%s1686_s1 + $0x28] sm:$0xff] }
  0x3a   : > { %v500_v16 = vld.sshfl [vmem:[#allocation1 + $0x8] sm:$0xff pattern:$0x75316420]  ;;  %v499_v17 = vld.sshfl [vmem:[#allocation1] sm:$0xff pattern:$0x75316420] }
  0x3b   : > { %505 = vrot.lane.b32.xlu1 %v500_v16, %s1428_s6  ;;  %408 = vrot.lane.b32.xlu2 %v403_v13, %s1427_s5  ;;  %593 = vst [vmem:[#allocation1] ss:$2 sm:$0xff] %v1517_v1  ;;  %s1102_s5 = sshll.u32 %s1098_s30, 4  ;;  %s1103_s5 = int_to_ptr.hbm [resolvable:$true] %s1102_s5 }
  0x40   : > { %v598_v18 = vld.sshfl [vmem:[#allocation1 + $0x10] sm:$0xff pattern:$0x75316420]  ;;  %v599_v19 = vld.sshfl [vmem:[#allocation1 + $0x18] sm:$0xff pattern:$0x75316420] }
  0x41   : > { %604 = vrot.lane.b32.xlu0 %v598_v18, %s1429_s7  ;;  %692 = vst [vmem:[#allocation1 + $0x10] ss:$2 sm:$0xff] %v1515_v0  ;;  %v1253_v18 = vld [vmem:[%s1686_s1 + $0x30] sm:$0xff] }
  0x42   : > { %v596_v20 = vld.sshfl [vmem:[#allocation1] sm:$0xff pattern:$0x75316420]  ;;  %v597_v21 = vld.sshfl [vmem:[#allocation1 + $0x8] sm:$0xff pattern:$0x75316420] }
  0x43   : > { %503 = vrot.lane.b32.xlu1 %v499_v17, %s1428_s6  ;;  %507 = vrot.lane.b32.xlu2 %v501_v14, %s1428_s6  ;;  %690 = vst [vmem:[#allocation1] ss:$2 sm:$0xff] %v1517_v1 }
  0x48   : > { %v695_v22 = vld.sshfl [vmem:[#allocation1 + $0x10] sm:$0xff pattern:$0x75316420]  ;;  %v696_v23 = vld.sshfl [vmem:[#allocation1 + $0x18] sm:$0xff pattern:$0x75316420] }
  0x49   : > { %602 = vrot.lane.b32.xlu0 %v597_v21, %s1429_s7  ;;  %789 = vst [vmem:[#allocation1 + $0x10] ss:$2 sm:$0xff] %v1515_v0 }
  0x4a   : > { %v693_v24 = vld.sshfl [vmem:[#allocation1] sm:$0xff pattern:$0x75316420]  ;;  %v694_v25 = vld.sshfl [vmem:[#allocation1 + $0x8] sm:$0xff pattern:$0x75316420] }
  0x4b   : > { %606 = vrot.lane.b32.xlu1 %v599_v19, %s1429_s7  ;;  %509 = vrot.lane.b32.xlu2 %v502_v15, %s1428_s6  ;;  %787 = vst [vmem:[#allocation1] ss:$2 sm:$0xff] %v1517_v1  ;;  %s1085_s6 = scalar_lea.sflag [#allocation3], %s201_s23 }
  0x50   : > { %v792_v26 = vld.sshfl [vmem:[#allocation1 + $0x10] sm:$0xff pattern:$0x75316420]  ;;  %v793_v27 = vld.sshfl [vmem:[#allocation1 + $0x18] sm:$0xff pattern:$0x75316420] }
  0x51   : > { %703 = vrot.lane.b32.xlu0 %v696_v23, %s1430_s8  ;;  %886 = vst [vmem:[#allocation1 + $0x10] ss:$2 sm:$0xff] %v1515_v0  ;;  %v1072_v23 = vld [vmem:[%s1687_s2] sm:$0xff] }
  0x52   : > { %v791_v28 = vld.sshfl [vmem:[#allocation1 + $0x8] sm:$0xff pattern:$0x75316420]  ;;  %v790_v29 = vld.sshfl [vmem:[#allocation1] sm:$0xff pattern:$0x75316420] }
  0x53   : > { %697 = vrot.lane.b32.xlu1 %v693_v24, %s1430_s8  ;;  %600 = vrot.lane.b32.xlu2 %v596_v20, %s1429_s7  ;;  %884 = vst [vmem:[#allocation1] ss:$2 sm:$0xff] %v1517_v1  ;;  %v1260_v20 = vld [vmem:[%s1686_s1 + $0x38] sm:$0xff]  ;;  %v1434_v24 = vmov 0   ;;  %s1360_s7 = sshra.s32 %s1103_s5, 4  ;;  %s1361_s7 = int_to_ptr.hbm [resolvable:$true] %s1360_s7 }
  0x54   : > { %1344 = vset.pattern.permute.xlu2 %v1434_v24  ;;  %1345 = vset.pattern.permute.xlu0 %v1434_v24  ;;  %p1367_p1 = scmp.lt.s32.totalorder %s1361_s7, %s1688_s3 }
  0x58   : > { %v889_v30 = vld.sshfl [vmem:[#allocation1 + $0x10] sm:$0xff pattern:$0x75316420]  ;;  %v890_v31 = vld.sshfl [vmem:[#allocation1 + $0x18] sm:$0xff pattern:$0x75316420] }
  0x59   : > { %794 = vrot.lane.b32.xlu0 %v790_v29, %s1431_s9  ;;  %983 = vst [vmem:[#allocation1 + $0x10] ss:$2 sm:$0xff] %v1515_v0 }
  0x5a   : > { %v888_v32 = vld.sshfl [vmem:[#allocation1 + $0x8] sm:$0xff pattern:$0x75316420]  ;;  %v887_v33 = vld.sshfl [vmem:[#allocation1] sm:$0xff pattern:$0x75316420] }
  0x5b   : > { %796 = vrot.lane.b32.xlu1 %v791_v28, %s1431_s9  ;;  %699 = vrot.lane.b32.xlu2 %v694_v25, %s1430_s8  ;;  %981 = vst [vmem:[#allocation1] ss:$2 sm:$0xff] %v1517_v1 }
  0x60   : > { %v986_v35 = vld.sshfl [vmem:[#allocation1 + $0x10] sm:$0xff pattern:$0x75316420]  ;;  %v987_v37 = vld.sshfl [vmem:[#allocation1 + $0x18] sm:$0xff pattern:$0x75316420] }
  0x61   : > { %895 = vrot.lane.b32.xlu0 %v889_v30, %s1432_s10 }
  0x62   : > { %v984_v34 = vld.sshfl [vmem:[#allocation1] sm:$0xff pattern:$0x75316420]  ;;  %v985_v36 = vld.sshfl [vmem:[#allocation1 + $0x8] sm:$0xff pattern:$0x75316420] }
  0x63   : > { %798 = vrot.lane.b32.xlu1 %v792_v26, %s1431_s9  ;;  %701 = vrot.lane.b32.xlu2 %v695_v22, %s1430_s8  ;;  %s1362_s8 = scalar_lea.hbm %s1361_s7, 24 }
  0x64   : > { %p1363_p12 = scmp.ne.s32.totalorder %s1361_s7, %s1362_s8 }
  0x66   : > { %p1364_p13 = pnand %p1363_p12, %p1495_p4 }
  0x68   : > { %p1365_p0 = pneg %p1364_p13 }
  0x69   : > { %897 = vrot.lane.b32.xlu0 %v890_v31, %s1432_s10 }
  0x6b   : > { %800 = vrot.lane.b32.xlu1 %v793_v27, %s1431_s9  ;;  %893 = vrot.lane.b32.xlu2 %v888_v32, %s1432_s10 }
  0x71   : > { %988 = vrot.lane.b32.xlu0 %v984_v34, %s1433_s11 }
  0x73   : > { %992 = vrot.lane.b32.xlu1 %v986_v35, %s1433_s11  ;;  %891 = vrot.lane.b32.xlu2 %v887_v33, %s1432_s10  ;;  %v1267_v35 = vld [vmem:[%s1686_s1 + $0x40] sm:$0xff] }
  0x7b   : > { %990 = vrot.lane.b32.xlu1 %v985_v36, %s1433_s11  ;;  %994 = vrot.lane.b32.xlu2 %v987_v37, %s1433_s11  ;;  %s1366_s11 = scalar_lea.hbm %s1688_s3, 48 }
  0x7c   : > { %p1368_p2 = scmp.lt.s32.totalorder %s1366_s11, %s1362_s8 }
  0x7e   : > { %p1369_p3 = por %p1368_p2, %p1367_p1 }
  0x80   : > { %p1370_p5 = pnand %p1369_p3, %p1365_p0 }
  0x83   : > { %1075 = vperm.xlu2 %1344, %v1072_v23  }
  0x8d   : > { %v407_v38 = vpop.permute.xlu2 %406 }
  0x93   : > { %v238_v40 = vpop.permute.xlu0 %237 }
  0x94   : > { %v234_v41 = vpop.permute.xlu1 %233 }
  0x95   : > { %v409_v42 = vpop.permute.xlu2 %408 }
  0x96   : > { %v415_v46 = vsel %vm414_vm3, %v407_v38, %v409_v42 }
  0x9b   : > { %v240_v43 = vpop.permute.xlu0 %239 }
  0x9c   : > { %v236_v44 = vpop.permute.xlu1 %235  ;;  %v244_v45 = vsel %vm241_vm2, %v238_v40, %v240_v43 }
  0x9d   : > { %v242_v47 = vsel %vm241_vm2, %v234_v41, %v236_v44  ;;  %v243_v48 = vsel %vm241_vm2, %v236_v44, %v238_v40  ;;  %1217 = vmatpush.msk.msra.mxu2 %vm249_vm0, %v244_v45  ;;  %v508_v49 = vpop.permute.xlu2 %507 }
  0x9e   : > { %1213 = vmatpush.msk.msra.mxu0 %vm249_vm0, %v242_v47  ;;  %1215 = vmatpush.msk.msra.mxu1 %vm249_vm0, %v243_v48 }
  0x9f   : > { %1226 = vmatpush.msk.msrb.mxu2 %vm249_vm0, %v415_v46  ;;  %1214 = vmatmul.msk.f32.vlgmr.msra.gmra.mxu0 %vm245_vm1, %v1212_v50 }
  0xa0   : > { %1221 = vmatpush.msk.msrb.mxu0 %vm249_vm0, %v1527_v9  ;;  %1216 = vmatmul.msk.f32.vlgmr.msra.gmra.mxu1 %vm245_vm1, %v1212_v50 }
  0xa1   : > { %1218 = vmatmul.msk.f32.vlgmr.msra.gmra.mxu2 %vm245_vm1, %v1212_v50  ;;  %1223 = vmatpush.msk.msrb.mxu1 %vm249_vm0, %v1522_v7 }
  0xa3   : > { %v411_v51 = vpop.permute.xlu0 %410 }
  0xa4   : > { %v416_v52 = vsel %vm414_vm3, %v409_v42, %v411_v51 }
  0xa5   : > { %1228 = vmatpush.msk.msrb.mxu3 %vm249_vm0, %v416_v52  ;;  %v510_v53 = vpop.permute.xlu2 %509 }
  0xa6   : > { %v514_v55 = vsel %vm511_vm4, %v508_v49, %v510_v53  ;;  %1229 = vmatmul.msk.f32.vlgmr.msrb.gmra.mxu3 %vm245_vm1, %v1225_v54 }
  0xa7   : > { %1237 = vmatpush.msk.msra.mxu3 %vm249_vm0, %v514_v55  ;;  %1222 = vmatmul.msk.f32.vlgmr.msrb.gmra.mxu0 %vm245_vm1, %v219_v39 }
  0xa8   : > { %1224 = vmatmul.msk.f32.vlgmr.msrb.gmra.mxu1 %vm245_vm1, %v219_v39 }
  0xa9   : > { %1227 = vmatmul.msk.f32.vlgmr.msrb.gmra.mxu2 %vm245_vm1, %v1225_v54 }
  0xab   : > { %v413_v56 = vpop.permute.xlu0 %412 }
  0xac   : > { %v417_v57 = vsel %vm414_vm3, %v411_v51, %v413_v56 }
  0xad   : > { %v506_v58 = vpop.permute.xlu1 %505  ;;  %1230 = vmatpush.msk.msra.mxu0 %vm249_vm0, %v417_v57  ;;  %v601_v59 = vpop.permute.xlu2 %600 }
  0xae   : > { %v513_v61 = vsel %vm511_vm4, %v506_v58, %v508_v49  ;;  %1238 = vmatmul.msk.f32.vlgmr.msra.gmra.mxu3 %vm245_vm1, %v1232_v60 }
  0xaf   : > { %1235 = vmatpush.msk.msra.mxu2 %vm249_vm0, %v513_v61  ;;  %1231 = vmatmul.msk.f32.vlgmr.msra.gmra.mxu0 %vm245_vm1, %v1225_v54  ;;  %v350_v44 = vpop.f32.mrf.mxu3 }
  0xb1   : > { %1236 = vmatmul.msk.f32.vlgmr.msra.gmra.mxu2 %vm245_vm1, %v1232_v60 }
  0xb3   : > { %v605_v62 = vpop.permute.xlu0 %604 }
  0xb5   : > { %v504_v63 = vpop.permute.xlu1 %503  ;;  %v700_v0 = vpop.permute.xlu2 %699 }
  0xb6   : > { %v512_v1 = vsel %vm511_vm4, %v504_v63, %v506_v58 }
  0xb7   : > { %1233 = vmatpush.msk.msra.mxu1 %vm249_vm0, %v512_v1 }
  0xb8   : > { %1234 = vmatmul.msk.f32.vlgmr.msra.gmra.mxu1 %vm245_vm1, %v1232_v60 }
  0xbb   : > { %v603_v2 = vpop.permute.xlu0 %602 }
  0xbc   : > { %v609_v4 = vsel %vm608_vm5, %v601_v59, %v603_v2  ;;  %v610_v5 = vsel %vm608_vm5, %v603_v2, %v605_v62 }
  0xbd   : > { %v607_v6 = vpop.permute.xlu1 %606  ;;  %1242 = vmatpush.msk.msrb.mxu1 %vm249_vm0, %v610_v5  ;;  %1240 = vmatpush.msk.msrb.mxu0 %vm249_vm0, %v609_v4  ;;  %v702_v7 = vpop.permute.xlu2 %701 }
  0xbe   : > { %v611_v8 = vsel %vm608_vm5, %v605_v62, %v607_v6  ;;  %v707_v9 = vsel %vm705_vm6, %v700_v0, %v702_v7  ;;  %1241 = vmatmul.msk.f32.vlgmr.msrb.gmra.mxu0 %vm245_vm1, %v1239_v3 }
  0xbf   : > { %1244 = vmatpush.msk.msrb.mxu2 %vm249_vm0, %v611_v8  ;;  %1249 = vmatpush.msk.msra.mxu0 %vm249_vm0, %v707_v9 }
  0xc0   : > { %1243 = vmatmul.msk.f32.vlgmr.msrb.gmra.mxu1 %vm245_vm1, %v1239_v3  ;;  %1245 = vmatmul.msk.f32.vlgmr.msrb.gmra.mxu2 %vm245_vm1, %v1239_v3 }
  0xc3   : > { %v704_v10 = vpop.permute.xlu0 %703 }
  0xc4   : > { %v708_v12 = vsel %vm705_vm6, %v702_v7, %v704_v10 }
  0xc5   : > { %v698_v13 = vpop.permute.xlu1 %697  ;;  %v894_v14 = vpop.permute.xlu2 %893  ;;  %1251 = vmatpush.msk.msra.mxu1 %vm249_vm0, %v708_v12 }
  0xc6   : > { %v706_v15 = vsel %vm705_vm6, %v698_v13, %v700_v0  ;;  %1250 = vmatmul.msk.f32.vlgmr.msra.gmra.mxu0 %vm245_vm1, %v1246_v11 }
  0xc7   : > { %1247 = vmatpush.msk.msrb.mxu3 %vm249_vm0, %v706_v15 }
  0xc8   : > { %1248 = vmatmul.msk.f32.vlgmr.msrb.gmra.mxu3 %vm245_vm1, %v1246_v11  ;;  %1252 = vmatmul.msk.f32.vlgmr.msra.gmra.mxu1 %vm245_vm1, %v1246_v11 }
  0xcb   : > { %v795_v16 = vpop.permute.xlu0 %794 }
  0xcd   : > { %v797_v17 = vpop.permute.xlu1 %796  ;;  %v892_v19 = vpop.permute.xlu2 %891 }
  0xce   : > { %v803_v21 = vsel %vm802_vm7, %v795_v16, %v797_v17  ;;  %v900_v22 = vsel %vm899_vm8, %v892_v19, %v894_v14 }
  0xcf   : > { %1254 = vmatpush.msk.msra.mxu2 %vm249_vm0, %v803_v21  ;;  %1261 = vmatpush.msk.msrb.mxu1 %vm249_vm0, %v900_v22 }
  0xd0   : > { %1255 = vmatmul.msk.f32.vlgmr.msra.gmra.mxu2 %vm245_vm1, %v1253_v18  ;;  %1262 = vmatmul.msk.f32.vlgmr.msrb.gmra.mxu1 %vm245_vm1, %v1260_v20 }
  0xd3   : > { %v896_v25 = vpop.permute.xlu0 %895 }
  0xd4   : > { %v901_v26 = vsel %vm899_vm8, %v894_v14, %v896_v25 }
  0xd5   : > { %v799_v27 = vpop.permute.xlu1 %798  ;;  %1263 = vmatpush.msk.msrb.mxu2 %vm249_vm0, %v901_v26  ;;  %v995_v33 = vpop.permute.xlu2 %994 }
  0xd6   : > { %v804_v28 = vsel %vm802_vm7, %v797_v17, %v799_v27 }
  0xd7   : > { %1256 = vmatpush.msk.msra.mxu3 %vm249_vm0, %v804_v28 }
  0xd8   : > { %1257 = vmatmul.msk.f32.vlgmr.msra.gmra.mxu3 %vm245_vm1, %v1253_v18  ;;  %1264 = vmatmul.msk.f32.vlgmr.msrb.gmra.mxu2 %vm245_vm1, %v1260_v20 }
  0xdb   : > { %v898_v29 = vpop.permute.xlu0 %897 }
  0xdc   : > { %v902_v30 = vsel %vm899_vm8, %v896_v25, %v898_v29 }
  0xdd   : > { %v801_v31 = vpop.permute.xlu1 %800  ;;  %1265 = vmatpush.msk.msrb.mxu3 %vm249_vm0, %v902_v30  ;;  %v1076_v21 = vpop.permute.xlu2 %1075 }
  0xde   : > { %v805_v32 = vsel %vm802_vm7, %v799_v27, %v801_v31 }
  0xdf   : > { %1258 = vmatpush.msk.msrb.mxu0 %vm249_vm0, %v805_v32 }
  0xe0   : > { %1259 = vmatmul.msk.f32.vlgmr.msrb.gmra.mxu0 %vm245_vm1, %v1253_v18  ;;  %1266 = vmatmul.msk.f32.vlgmr.msrb.gmra.mxu3 %vm245_vm1, %v1260_v20 }
  0xe3   : > { %v989_v37 = vpop.permute.xlu0 %988 }
  0xe5   : > { %v993_v34 = vpop.permute.xlu1 %992 }
  0xe6   : > { %v999_v36 = vsel %vm996_vm9, %v993_v34, %v995_v33 }
  0xe7   : > { %1272 = vmatpush.msk.msra.mxu2 %vm249_vm0, %v999_v36 }
  0xe8   : > { %1273 = vmatmul.msk.f32.vlgmr.msra.gmra.mxu2 %vm245_vm1, %v1267_v35 }
  0xed   : > { %v991_v38 = vpop.permute.xlu1 %990 }
  0xee   : > { %v998_v39 = vsel %vm996_vm9, %v991_v38, %v993_v34  ;;  %v997_v40 = vsel %vm996_vm9, %v989_v37, %v991_v38 }
  0xef   : > { %1268 = vmatpush.msk.msra.mxu0 %vm249_vm0, %v997_v40  ;;  %1270 = vmatpush.msk.msra.mxu1 %vm249_vm0, %v998_v39 }
  0xf0   : > { %1269 = vmatmul.msk.f32.vlgmr.msra.gmra.mxu0 %vm245_vm1, %v1267_v35  ;;  %1271 = vmatmul.msk.f32.vlgmr.msra.gmra.mxu1 %vm245_vm1, %v1267_v35 }
 0x11c   : > { %v273_v41 = vpop.f32.mrf.mxu0 }
 0x11d   : > { %v293_v42 = vpop.f32.mrf.mxu1  ;;  %v351_v59 = vadd.f32 %v350_v44, %v273_v41 }
 0x124   : > { %v313_v43 = vpop.f32.mrf.mxu2  ;;  %v370_v45 = vpop.f32.mrf.mxu0 }
 0x125   : > { %v390_v46 = vpop.f32.mrf.mxu1  ;;  %v371_v57 = vadd.f32 %v370_v45, %v293_v42 }
 0x126   : > { %v391_v58 = vadd.f32 %v390_v46, %v313_v43 }
 0x129   : > { %v464_v48 = vpop.f32.mrf.mxu3 }
 0x12a   : > { %v488_v60 = vadd.f32 %v464_v48, %v371_v57 }
 0x12c   : > { %v444_v47 = vpop.f32.mrf.mxu2  ;;  %v484_v49 = vpop.f32.mrf.mxu0 }
 0x12d   : > { %v489_v61 = vadd.f32 %v484_v49, %v391_v58  ;;  %v487_v63 = vadd.f32 %v444_v47, %v351_v59 }
 0x131   : > { %v581_v52 = vpop.f32.mrf.mxu3 }
 0x132   : > { %v586_v4 = vadd.f32 %v581_v52, %v489_v61 }
 0x134   : > { %v561_v51 = vpop.f32.mrf.mxu2 }
 0x135   : > { %v541_v50 = vpop.f32.mrf.mxu1  ;;  %v585_v3 = vadd.f32 %v561_v51, %v488_v60 }
 0x136   : > { %v584_v5 = vadd.f32 %v541_v50, %v487_v63 }
 0x13b   : > { %v638_v53 = vpop.f32.mrf.mxu0 }
 0x13c   : > { %v681_v9 = vadd.f32 %v638_v53, %v584_v5 }
 0x13d   : > { %v658_v54 = vpop.f32.mrf.mxu1 }
 0x13e   : > { %v682_v6 = vadd.f32 %v658_v54, %v585_v3 }
 0x143   : > { %v678_v55 = vpop.f32.mrf.mxu2  ;;  %v755_v0 = vpop.f32.mrf.mxu0 }
 0x144   : > { %v683_v7 = vadd.f32 %v678_v55, %v586_v4  ;;  %v779_v13 = vadd.f32 %v755_v0, %v682_v6 }
 0x145   : > { %v775_v1 = vpop.f32.mrf.mxu1 }
 0x146   : > { %v780_v14 = vadd.f32 %v775_v1, %v683_v7 }
 0x14b   : > { %v735_v56 = vpop.f32.mrf.mxu3 }
 0x14c   : > { %v778_v12 = vadd.f32 %v735_v56, %v681_v9 }
 0x14d   : > { %v929_v10 = vpop.f32.mrf.mxu1 }
 0x153   : > { %v832_v62 = vpop.f32.mrf.mxu2 }
 0x154   : > { %v875_v16 = vadd.f32 %v832_v62, %v778_v12 }
 0x156   : > { %v972_v22 = vadd.f32 %v929_v10, %v875_v16 }
 0x15b   : > { %v852_v2 = vpop.f32.mrf.mxu3  ;;  %v949_v8 = vpop.f32.mrf.mxu2 }
 0x15c   : > { %v876_v17 = vadd.f32 %v852_v2, %v779_v13 }
 0x15d   : > { %v872_v11 = vpop.f32.mrf.mxu0 }
 0x15e   : > { %v877_v18 = vadd.f32 %v872_v11, %v780_v14  ;;  %v973_v23 = vadd.f32 %v949_v8, %v876_v17 }
 0x163   : > { %v969_v15 = vpop.f32.mrf.mxu3 }
 0x164   : > { %v974_v19 = vadd.f32 %v969_v15, %v877_v18 }
 0x16b   : > { %v1066_v20 = vpop.f32.mrf.mxu2 }
 0x16c   : > { %v1071_v24 = vadd.f32 %v1066_v20, %v974_v19 }
 0x16d   : > { %v1026_v25 = vpop.f32.mrf.mxu0  ;;  %v1046_v26 = vpop.f32.mrf.mxu1 }
 0x16e   : > { %v1080_v27 = vadd.f32 %v1076_v21, %v1071_v24  ;;  %v1069_v28 = vadd.f32 %v1026_v25, %v972_v22  ;;  %v1070_v29 = vadd.f32 %v1046_v26, %v973_v23 }
 0x170   : > { %1083 = vst [vmem:[%s203_s15 + $0x10] sm:$0xff] %v1080_v27  ;;  %v1078_v30 = vadd.f32 %v1076_v21, %v1069_v28  ;;  %v1079_v31 = vadd.f32 %v1076_v21, %v1070_v29 }
 0x172   : > { %1081 = vst [vmem:[%s203_s15] sm:$0xff] %v1078_v30 }
 0x173   : > { %1082 = vst [vmem:[%s203_s15 + $0x8] sm:$0xff] %v1079_v31 }
 0x174   : > { %1373 = shalt.err (!%p1370_p5)
}
 0x175   : > { %1280 = dma.vmem_to_hbm [thread:$0]  (%p1495_p4), %s1101_s4, 384, %s1103_s5, %s1085_s6  }
 0x176 PF: > { %p1286_p6 = scmp.ge.s32.totalorder %s1424_s17, 2  ;;  %s1114_s21 = sand.u32 1, %s1404_s12  }
 0x177   : > { %s1115_s23 = scalar_lea.sflag [#allocation3], %s1114_s21 }
 0x178   : > { %p1283_p7 = pnand %p1286_p6, %p1502_p8 }
 0x17a   : > { %p1284_p9 = pneg %p1283_p7 }
 0x17c   : > { %1399 = dma.done.wait (%p1284_p9), %s1115_s23, 384  }
 0x17d   : > { %1401 = vsyncadd (%p1284_p9), %s1115_s23, 4294966912  ;;  %s16_s17 = sadd.s32 1, %s1424_s17   ;;  %s1691_s12 = smov %s1408_s13 }
 0x17e   : > { %p13_p10 = scmp.ge.s32.totalorder %s16_s17, 4   ;;  %s1692_s13 = smov %s1412_s14 }
 0x17f   : > { %s1693_s14 = smov %s1508_s25  ;;  %s1694_s15 = smov %s1420_s16 }
 0x180   : > { %s1695_s16 = smov %s1697_s20  ;;  %15 = sbr.rel (!%p13_p10) target bundleno = 4 (0x4), region = 90 }
 0x185   :  { %1121 = vsyncpa [#allocation3], 1 }
 0x186   :  { %1123 = vsyncpa [#allocation3 + $0x1], 1 }

</bundles_post_ra>
